<compile_context>
chip_gen: v5e
topology: v5e:2x2
jax: 0.10.0
libtpu: 0.0.40
codegen_flags: <defaults>
</compile_context>

<pallas_src>
import functools

import jax
import jax.numpy as jnp
from jax import lax
from jax.experimental import pallas as pl
from jax.experimental.pallas import tpu as pltpu


def _round_up(v, m):
    return ((v + m - 1) // m) * m


def gaussian_kernel_body(xr_ref, xc_ref, rown_ref, coln_ref, out_ref, *,
                         inner_scale):
    # xr_ref:   (tm, D)  row block for this tile            (original dtype)
    # xc_ref:   (tn, D)  column block for this tile         (original dtype)
    # rown_ref: (tm, 1)  row norms pre-scaled by -1/(2 s^2) (f32)
    # coln_ref: (1, tn)  col norms pre-scaled by -1/(2 s^2) (f32)
    # Inner-product tile (tm, tn): contract the feature axis of both operands
    # directly on the MXU -- no transpose of x is materialized.
    inner = lax.dot_general(
        xr_ref[...], xc_ref[...],
        dimension_numbers=(((1,), (1,)), ((), ())),
        preferred_element_type=jnp.float32,
    )
    # exp(s*(rn + cn - 2*inner)) == exp(rn*s + cn*s + inner*(-2*s)),
    # with rn*s / cn*s precomputed in the wrapper and inner_scale = -2*s.
    out_ref[...] = jnp.exp(
        rown_ref[...] + coln_ref[...] + inner * inner_scale
    ).astype(out_ref.dtype)


def gaussian_kernel_pallas(x, sigma, *, block_rows=256, block_cols=1024,
                           out_dtype=None):
    """exp(-||x_i - x_j||^2 / (2 sigma^2)) for all pairs; x is (N, D)."""
    assert sigma > 0
    n, d = x.shape
    out_dtype = x.dtype if out_dtype is None else out_dtype

    # Tile sizes: tm must be a multiple of 8 and tn a multiple of 128 when
    # the axis is tiled (otherwise a single full-extent block is used).
    tm = n if n <= block_rows else _round_up(block_rows, 8)
    tn = n if n <= block_cols else _round_up(block_cols, 128)
    grid = (pl.cdiv(n, tm), pl.cdiv(n, tn))

    neg_inv_two_sigma_sq = -1.0 / (2.0 * float(sigma) ** 2)

    # Hoist squared row norms out of the kernel (one-time O(N*D) XLA op),
    # already multiplied by -1/(2 sigma^2).
    norms = jnp.sum(jnp.square(x.astype(jnp.float32)), axis=-1)
    norms = norms * neg_inv_two_sigma_sq
    row_norms = norms.reshape(n, 1)
    col_norms = norms.reshape(1, n)

    kernel = functools.partial(
        gaussian_kernel_body,
        inner_scale=-2.0 * neg_inv_two_sigma_sq,   # == 1 / sigma^2
    )

    return pl.pallas_call(
        kernel,
        out_shape=jax.ShapeDtypeStruct((n, n), out_dtype),
        grid_spec=pltpu.PrefetchScalarGridSpec(
            num_scalar_prefetch=0,
            grid=grid,
            in_specs=[
                pl.BlockSpec((tm, d), lambda i, j: (i, 0)),   # row block
                pl.BlockSpec((tn, d), lambda i, j: (j, 0)),   # col block
                pl.BlockSpec((tm, 1), lambda i, j: (i, 0)),   # scaled row norms
                pl.BlockSpec((1, tn), lambda i, j: (0, j)),   # scaled col norms
            ],
            out_specs=pl.BlockSpec((tm, tn), lambda i, j: (i, j)),
        ),
        compiler_params=pltpu.CompilerParams(
            dimension_semantics=("parallel", "parallel"),     # megacore sharding
        ),
    )(x, x, row_norms, col_norms)


def gaussian_kernel_ref(x, sigma):
    # Pure-JAX mirror of the PyTorch module, for verification.
    x = x.astype(jnp.float32)
    inner = x @ x.T
    norm = jnp.diag(inner)
    dist_sq = norm[None, :] + norm[:, None] - 2.0 * inner
    return jnp.exp(-dist_sq / (2.0 * float(sigma) ** 2))


if __name__ == "__main__":
    key = jax.random.PRNGKey(0)
    k_small, k_big = jax.random.split(key)

    # Small case consistent with the module usage: batch=8, feature=32.
    x_small = jax.random.normal(k_small, (8, 32), dtype=jnp.float32)
    out = jax.block_until_ready(gaussian_kernel_pallas(x_small, sigma=2.0))
    ref = jax.block_until_ready(gaussian_kernel_ref(x_small, sigma=2.0))
    assert out.shape == (8, 8)
    assert jnp.allclose(out, ref, rtol=1e-4, atol=1e-4), (out, ref)

    # Larger case exercising the 2-D (row, col) tiled grid path: grid (2, 2).
    x_big = jax.random.normal(k_big, (256, 32), dtype=jnp.float32)
    out_b = jax.block_until_ready(
        gaussian_kernel_pallas(x_big, sigma=4.0, block_rows=128, block_cols=128))
    ref_b = jax.block_until_ready(gaussian_kernel_ref(x_big, sigma=4.0))
    assert jnp.allclose(out_b, ref_b, rtol=1e-4, atol=1e-4)

    # bf16 output path (halves the N^2 HBM writeback bytes).
    out_bf16 = jax.block_until_ready(
        gaussian_kernel_pallas(x_big, sigma=4.0, block_rows=128,
                               block_cols=128, out_dtype=jnp.bfloat16))
    assert jnp.allclose(out_bf16.astype(jnp.float32), ref_b,
                        rtol=2e-2, atol=2e-2)

    print("KERNEL_OK")
</pallas_src>

<mosaic_0001>
module attributes {stable_mosaic.version = 11 : i64} {
  func.func @gaussian_kernel_body(%arg0: i32, %arg1: i32, %arg2: memref<8x32xf32, #tpu.memory_space<vmem>>, %arg3: memref<8x32xf32, #tpu.memory_space<vmem>>, %arg4: memref<8x1xf32, #tpu.memory_space<vmem>>, %arg5: memref<1x8xf32, #tpu.memory_space<vmem>>, %arg6: memref<8x8xf32, #tpu.memory_space<vmem>>) attributes {dimension_semantics = [#tpu.dimension_semantics<parallel>, #tpu.dimension_semantics<parallel>], iteration_bounds = array<i64: 1, 1>, scalar_prefetch = 0 : i64, scratch_operands = 0 : i64, tpu.core_type = #tpu.core_type<tc>, window_params = [{transform_indices = @transform_0, window_bounds = array<i64: 8, 32>}, {transform_indices = @transform_1, window_bounds = array<i64: 8, 32>}, {transform_indices = @transform_2, window_bounds = array<i64: 8, 1>}, {transform_indices = @transform_3, window_bounds = array<i64: 1, 8>}, {transform_indices = @transform_4, window_bounds = array<i64: 8, 8>}]} {
    %c0 = arith.constant 0 : index
    %c0_0 = arith.constant 0 : index
    %0 = vector.load %arg2[%c0, %c0_0] : memref<8x32xf32, #tpu.memory_space<vmem>>, vector<8x32xf32>
    %c0_1 = arith.constant 0 : index
    %c0_2 = arith.constant 0 : index
    %1 = vector.load %arg3[%c0_1, %c0_2] : memref<8x32xf32, #tpu.memory_space<vmem>>, vector<8x32xf32>
    %cst = arith.constant dense<0.000000e+00> : vector<8x8xf32>
    %2 = tpu.matmul %0, %1, %cst {dimension_numbers = #tpu.dot_dimension_numbers<[1], [1], [0], [0], [0, 0, 1, 0], [], []>} : vector<8x32xf32>, vector<8x32xf32>, vector<8x8xf32> -> vector<8x8xf32>
    %c0_3 = arith.constant 0 : index
    %c0_4 = arith.constant 0 : index
    %3 = vector.load %arg4[%c0_3, %c0_4] : memref<8x1xf32, #tpu.memory_space<vmem>>, vector<8x1xf32>
    %c0_5 = arith.constant 0 : index
    %c0_6 = arith.constant 0 : index
    %4 = vector.load %arg5[%c0_5, %c0_6] : memref<1x8xf32, #tpu.memory_space<vmem>>, vector<1x8xf32>
    %5 = vector.broadcast %3 : vector<8x1xf32> to vector<8x8xf32>
    %6 = vector.broadcast %4 : vector<1x8xf32> to vector<8x8xf32>
    %7 = arith.addf %5, %6 : vector<8x8xf32>
    %cst_7 = arith.constant 2.500000e-01 : f32
    %8 = vector.broadcast %cst_7 : f32 to vector<8x8xf32>
    %9 = arith.mulf %2, %8 : vector<8x8xf32>
    %10 = arith.addf %7, %9 : vector<8x8xf32>
    %11 = math.exp %10 : vector<8x8xf32>
    %c0_8 = arith.constant 0 : index
    %c0_9 = arith.constant 0 : index
    %12 = vector.load %arg6[%c0_8, %c0_9] : memref<8x8xf32, #tpu.memory_space<vmem>>, vector<8x8xf32>
    tpu.vector_store %arg6[%c0_8, %c0_9], %11 {strides = array<i32>} : memref<8x8xf32, #tpu.memory_space<vmem>>, vector<8x8xf32>,
    return
  }
  func.func @transform_0(%arg0: i32, %arg1: i32) -> (i32, i32) {
    %c0_i32 = arith.constant 0 : i32
    %c0_i32_0 = arith.constant 0 : i32
    return %arg0, %c0_i32 : i32, i32
  }
  func.func @transform_1(%arg0: i32, %arg1: i32) -> (i32, i32) {
    %c0_i32 = arith.constant 0 : i32
    %c0_i32_0 = arith.constant 0 : i32
    return %arg1, %c0_i32 : i32, i32
  }
  func.func @transform_2(%arg0: i32, %arg1: i32) -> (i32, i32) {
    %c0_i32 = arith.constant 0 : i32
    %c0_i32_0 = arith.constant 0 : i32
    return %arg0, %c0_i32 : i32, i32
  }
  func.func @transform_3(%arg0: i32, %arg1: i32) -> (i32, i32) {
    %c0_i32 = arith.constant 0 : i32
    %c0_i32_0 = arith.constant 0 : i32
    return %c0_i32, %arg1 : i32, i32
  }
  func.func @transform_4(%arg0: i32, %arg1: i32) -> (i32, i32) {
    %c0_i32 = arith.constant 0 : i32
    return %arg0, %arg1 : i32, i32
  }
}

</mosaic_0001>

<bundles_post_ra>
// kernel: tpu_custom_call.1
= control target key start
LH: loop header
LB: loop body
LE: loop exit
PB: predicated region body
PF: predicated region fallthrough
CT: control target
= control target key end

     0   :  { %9 = vsyncpa [#allocation3], 0  ;;  %s199_s0 = inlined_call_operand.vmem [shape: f32[8,32], index: 0, kind: input, shape index: {}]   ;;  %s200_s1 = inlined_call_operand.hbm [shape: f32[8,32], index: 1, kind: input, shape index: {}]   ;;  %s201_s2 = inlined_call_operand.vmem [shape: f32[8,1], index: 2, kind: input, shape index: {}]   ;;  %s202_s3 = inlined_call_operand.vmem [shape: f32[1,8], index: 3, kind: input, shape index: {}]   ;;  %s203_s4 = inlined_call_operand.hbm [shape: f32[8,8], index: 4, kind: output, shape index: {}]  }
   0x1   :  { %10 = vsyncpa [#allocation4], 0  ;;  %s18_s17 = sshll.u32 %s200_s1, 4  ;;  %s156_s18 = smov [#allocation2]   ;;  %s19_s17 = int_to_ptr.hbm [resolvable:$true] %s18_s17 }
   0x2   :  { %s20_s19 = sshll.u32 %s156_s18, 4  ;;  %s21_s19 = int_to_ptr.vmem [resolvable:$true] %s20_s19 }
   0x3   :  { %23 = dma.hbm_to_vmem [thread:$0]  %s19_s17, 128, %s21_s19, [#allocation3]  }
   0x4   :  { %152 = dma.done.wait [#allocation3], 128  }
   0x5   :  { %153 = vsyncadd [#allocation3], 4294967168  ;;  %v157_v0 = vmov 0   ;;  %vm34_vm0 = vcmask 261120   ;;  %v33_v1 = vld [vmem:[#allocation2] sm:$0xff]  ;;  %s158_s25 = smov [#allocation5]  }
   0x6   :  { %100 = vset.pattern.permute.xlu0 %v157_v0  ;;  %v61_v2 = vld [vmem:[%s201_s2] sm:$0xff]  ;;  %95 = vmatpush.xpose.msk.msra.mxu0 %vm34_vm0, %v33_v1  ;;  %s83_s2 = sshll.u32 %s158_s25, 4  ;;  %s85_s28 = sshll.u32 %s203_s4, 4  ;;  %vm76_vm1 = vcmask 64512   ;;  %s84_s2 = int_to_ptr.vmem [resolvable:$true] %s83_s2  ;;  %s86_s28 = int_to_ptr.hbm [resolvable:$true] %s85_s28 }
   0x7   :  { %v32_v3 = vld [vmem:[%s199_s0] sm:$0xff]  ;;  %65 = vperm.xlu0 %100, %v61_v2  }
   0x8   :  { %v101_v4 = vld [vmem:[%s202_s3] ss:$0 sm:$0xff] }
   0x9   :  { %96 = vmatmul.msk.f32.vlgmr.msra.gmra.mxu0 %vm34_vm0, %v32_v3 }
  0x79   :  { %v66_v5 = vpop.permute.xlu0 %65 }
  0x7a   :  { %v71_v6 = vadd.f32 %v101_v4, %v66_v5 }
  0x86   :  { %v58_v7 = vpop.f32.mrf.mxu0 }
  0x87   :  { %v72_v8 = vmul.f32 0.25, %v58_v7 }
  0x89   :  { %v73_v9 = vadd.f32 %v72_v8, %v71_v6 }
  0x8b   :  { %v74_v10 = vmul.f32 1.442695, %v73_v9 }
  0x8d   :  { %102 = vpow2.f32 %v74_v10 }
  0x93   :  { %v103_v11 = vpop.eup %102 }
  0x94   :  { %77 = vst.msk [vmem:[#allocation5] sm:$0xff] %vm76_vm1, %v103_v11 }
  0x95   :  { %88 = dma.vmem_to_hbm [thread:$0]  %s84_s2, 128, %s86_s28, [#allocation4]  }
  0x96   :  { %154 = dma.done.wait [#allocation4], 128  }
  0x97   :  { %155 = vsyncadd [#allocation4], 4294967168 }
  0x98   :  { %93 = vsyncpa [#allocation3], 1 }
  0x99   :  { %94 = vsyncpa [#allocation4], 1 }

</bundles_post_ra>
